<compile_context>
chip_gen: v7x
topology: tpu7x:2x2x1
jax: 0.10.0
libtpu: 0.0.40
codegen_flags: <defaults>
</compile_context>

<pallas_src>
import functools

import jax
import jax.numpy as jnp
from jax import lax
from jax.experimental import pallas as pl
from jax.experimental.pallas import tpu as pltpu

BN_EPS = 1e-5


def _pick_time_tile(lout, target):
    """Largest lane-friendly time tile: prefer 128-multiples that divide Lout."""
    if lout <= target:
        return lout
    aligned = [d for d in range(128, target + 1, 128) if lout % d == 0]
    if aligned:
        return aligned[-1]
    # No 128-aligned divisor: fall back to the full length (always a legal block; still
    # only a few MiB per tile at realistic sizes) rather than risking unaligned lane tiles.
    return lout


def convnet1_forward(x, params, *, time_tile=2048, compute_dtype=jnp.bfloat16):
    """x: (N, 3, L) float32 -> (N, 1) float32."""
    w_conv, b_conv, gamma, beta, w_lin, b_lin = params
    N, Cin, L = x.shape
    Cout, _, K = w_conv.shape
    stride, pad = 2, 1
    Lout = (L + 2 * pad - K) // stride + 1            # == L // 2 for this config

    # ---- glue: compact tap views + parameter reshapes (layout only, no hot compute) ----
    x_pad = jnp.pad(x, ((0, 0), (0, 0), (pad, pad)))
    # taps[n, k*Cin + ci, t] = x_pad[n, ci, 2*t + k]   (time stays in the lane dimension)
    taps = jnp.concatenate([x_pad[:, :, k:k + 2 * Lout:2] for k in range(K)], axis=1)
    taps = taps.astype(compute_dtype)
    wconv_mat = jnp.transpose(w_conv, (0, 2, 1)).reshape(Cout, Cin * K).astype(compute_dtype)
    # torch Linear weight is (1, Cout*Lout) with flat index c*Lout + t  ->  (Cout, Lout)
    wlin_mat = w_lin.reshape(Cout, Lout).astype(jnp.float32)
    wlin_rowsum = jnp.sum(wlin_mat, axis=1, keepdims=True)           # (Cout, 1)
    bconv_col = b_conv.reshape(Cout, 1).astype(jnp.float32)
    gamma_col = gamma.reshape(Cout, 1).astype(jnp.float32)
    beta_col = beta.reshape(Cout, 1).astype(jnp.float32)
    blin_vec = b_lin.reshape(1).astype(jnp.float32)

    tt = _pick_time_tile(Lout, time_tile)
    n_tt = Lout // tt
    inv_count = 1.0 / float(N * Lout)                 # BN uses biased batch stats (training)

    def kernel(taps_ref, wlin_ref, wconv_ref, bconv_ref, gamma_ref, beta_ref,
               wlsum_ref, blin_ref, out_ref, s_sc, ss_sc, q_sc):
        t = pl.program_id(0)

        @pl.when(t == 0)
        def _init():
            s_sc[...] = jnp.zeros_like(s_sc)
            ss_sc[...] = jnp.zeros_like(ss_sc)
            q_sc[...] = jnp.zeros_like(q_sc)

        wl = wlin_ref[...]                            # (Cout, tt)  f32
        wc = wconv_ref[...]                           # (Cout, Cin*K) bf16
        bc = bconv_ref[...]                           # (Cout, 1)   f32
        lane_ids = lax.broadcasted_iota(jnp.int32, (1, N), 1)

        s_acc = jnp.zeros((Cout, 1), jnp.float32)
        ss_acc = jnp.zeros((Cout, 1), jnp.float32)
        q_acc = jnp.zeros((Cout, N), jnp.float32)
        for i in range(N):                            # static (unrolled) batch loop
            # Conv1d(stride=2, pad=1) + bias + ReLU for sample i over this time tile.
            y = jnp.dot(wc, taps_ref[i], preferred_element_type=jnp.float32)   # (Cout, tt)
            y = jnp.maximum(y + bc, 0.0)
            s_acc = s_acc + jnp.sum(y, axis=1, keepdims=True)
            ss_acc = ss_acc + jnp.sum(y * y, axis=1, keepdims=True)
            q_i = jnp.sum(y * wl, axis=1, keepdims=True)                       # (Cout, 1)
            # scatter sample i's column via a one-hot lane mask (pure VPU broadcast ops)
            q_acc = q_acc + q_i * (lane_ids == i).astype(jnp.float32)
        s_sc[...] += s_acc
        ss_sc[...] += ss_acc
        q_sc[...] += q_acc

        @pl.when(t == pl.num_programs(0) - 1)
        def _finalize():
            mean = s_sc[...] * inv_count                                       # (Cout, 1)
            var = jnp.maximum(ss_sc[...] * inv_count - mean * mean, 0.0)
            scale = gamma_ref[...] * lax.rsqrt(var + BN_EPS)                   # folded BN
            shift = beta_ref[...] - mean * scale
            per_sample = jnp.sum(scale * q_sc[...], axis=0, keepdims=True)     # (1, N)
            const = jnp.sum(shift * wlsum_ref[...], axis=0, keepdims=True)     # (1, 1)
            logits = per_sample + const + blin_ref[0]
            out_ref[...] = 1.0 / (1.0 + jnp.exp(-logits))                      # sigmoid

    out_row = pl.pallas_call(
        kernel,
        out_shape=jax.ShapeDtypeStruct((1, N), jnp.float32),
        grid=(n_tt,),
        in_specs=[
            pl.BlockSpec((N, Cin * K, tt), lambda t: (0, 0, t)),   # taps   (streamed once)
            pl.BlockSpec((Cout, tt), lambda t: (0, t)),            # wlin   (streamed once)
            pl.BlockSpec((Cout, Cin * K), lambda t: (0, 0)),       # conv weight (resident)
            pl.BlockSpec((Cout, 1), lambda t: (0, 0)),             # conv bias
            pl.BlockSpec((Cout, 1), lambda t: (0, 0)),             # bn gamma
            pl.BlockSpec((Cout, 1), lambda t: (0, 0)),             # bn beta
            pl.BlockSpec((Cout, 1), lambda t: (0, 0)),             # row-sums of wlin
            pl.BlockSpec(memory_space=pltpu.MemorySpace.SMEM),     # b_lin scalar in SMEM
        ],
        out_specs=pl.BlockSpec((1, N), lambda t: (0, 0)),          # lane-dense output
        scratch_shapes=[
            pltpu.VMEM((Cout, 1), jnp.float32),                    # per-channel sum
            pltpu.VMEM((Cout, 1), jnp.float32),                    # per-channel sum-of-sq
            pltpu.VMEM((Cout, N), jnp.float32),                    # per-sample q[n, c]
        ],
        compiler_params=pltpu.CompilerParams(
            dimension_semantics=("arbitrary",)),                   # carries global BN stats
    )(taps, wlin_mat, wconv_mat, bconv_col, gamma_col, beta_col, wlin_rowsum, blin_vec)

    return out_row.reshape(N, 1)


def ref_forward(x, params, eps=BN_EPS, compute_dtype=jnp.bfloat16):
    """Pure-JAX reference mirroring the PyTorch forward (training-mode BN).

    Conv inputs/weights are cast to `compute_dtype` with f32 accumulation, matching the
    kernel's bf16-input MXU path; everything downstream stays f32.
    """
    w_conv, b_conv, gamma, beta, w_lin, b_lin = params
    N, Cin, L = x.shape
    Cout, _, K = w_conv.shape
    Lout = (L + 2 - K) // 2 + 1
    x_pad = jnp.pad(x, ((0, 0), (0, 0), (1, 1)))
    y = jnp.zeros((N, Cout, Lout), jnp.float32)
    for k in range(K):
        xs = x_pad[:, :, k:k + 2 * Lout:2].astype(compute_dtype)   # strided taps
        wk = w_conv[:, :, k].astype(compute_dtype)
        y = y + jnp.einsum("nil,oi->nol", xs, wk, preferred_element_type=jnp.float32)
    y = jnp.maximum(y + b_conv[None, :, None], 0.0)
    mean = jnp.mean(y, axis=(0, 2), keepdims=True)
    var = jnp.mean((y - mean) ** 2, axis=(0, 2), keepdims=True)
    z = (y - mean) * lax.rsqrt(var + eps) * gamma[None, :, None] + beta[None, :, None]
    logits = z.reshape(N, -1) @ w_lin.T + b_lin
    return jax.nn.sigmoid(logits)


def init_params(key, window_size, cin=3, cout=32, k=3):
    lout = window_size // 2
    k1, k2, k3, k4 = jax.random.split(key, 4)
    bound_conv = 1.0 / float((cin * k) ** 0.5)
    w_conv = jax.random.uniform(k1, (cout, cin, k), jnp.float32, -bound_conv, bound_conv)
    b_conv = jax.random.uniform(k2, (cout,), jnp.float32, -bound_conv, bound_conv)
    gamma = jnp.full((cout,), 27.0, jnp.float32)       # self.bn1.weight = 27
    beta = jnp.full((cout,), 27.0, jnp.float32)        # self.bn1.bias   = 27
    scale = 0.005                                      # keep logits out of hard saturation
    w_lin = jax.random.uniform(k3, (1, cout * lout), jnp.float32, -scale, scale)
    b_lin = jax.random.uniform(k4, (1,), jnp.float32, -scale, scale)
    return (w_conv, b_conv, gamma, beta, w_lin, b_lin)


if __name__ == "__main__":
    window_size = 512      # small stand-in for the module's window_size = 10000
    N, Cin = 2, 3
    key = jax.random.PRNGKey(0)
    kx, kp = jax.random.split(key)
    x = jax.random.normal(kx, (N, Cin, window_size), dtype=jnp.float32)
    params = init_params(kp, window_size)

    # time_tile=128 -> Lout=256 splits into 2 grid steps, exercising init/accumulate/finalize.
    fwd = jax.jit(functools.partial(convnet1_forward, time_tile=128))
    out = jax.block_until_ready(fwd(x, params))

    ref = ref_forward(x, params)
    assert out.shape == (N, 1), f"bad output shape {out.shape}"
    if not jnp.allclose(out, ref, atol=1e-3, rtol=1e-3):
        raise AssertionError(f"mismatch: kernel={out.ravel()} ref={ref.ravel()}")
    print("KERNEL_OK")
</pallas_src>

<mosaic_0001>
module attributes {stable_mosaic.version = 11 : i64} {
  func.func @kernel(%arg0: i32, %arg1: memref<2x9x128xbf16, #tpu.memory_space<vmem>>, %arg2: memref<32x128xf32, #tpu.memory_space<vmem>>, %arg3: memref<32x9xbf16, #tpu.memory_space<vmem>>, %arg4: memref<32x1xf32, #tpu.memory_space<vmem>>, %arg5: memref<32x1xf32, #tpu.memory_space<vmem>>, %arg6: memref<32x1xf32, #tpu.memory_space<vmem>>, %arg7: memref<32x1xf32, #tpu.memory_space<vmem>>, %arg8: memref<1xf32, #tpu.memory_space<smem>>, %arg9: memref<1x2xf32, #tpu.memory_space<vmem>>, %arg10: memref<32x1xf32, #tpu.memory_space<vmem>>, %arg11: memref<32x1xf32, #tpu.memory_space<vmem>>, %arg12: memref<32x2xf32, #tpu.memory_space<vmem>>) attributes {dimension_semantics = [#tpu.dimension_semantics<arbitrary>], iteration_bounds = array<i64: 2>, scalar_prefetch = 0 : i64, scratch_operands = 3 : i64, tpu.core_type = #tpu.core_type<tc>, window_params = [{transform_indices = @transform_0, window_bounds = array<i64: 2, 9, 128>}, {transform_indices = @transform_1, window_bounds = array<i64: 32, 128>}, {pipeline_mode = #tpu.pipeline_mode<synchronous>, transform_indices = @transform_2, window_bounds = array<i64: 32, 9>}, {pipeline_mode = #tpu.pipeline_mode<synchronous>, transform_indices = @transform_3, window_bounds = array<i64: 32, 1>}, {pipeline_mode = #tpu.pipeline_mode<synchronous>, transform_indices = @transform_4, window_bounds = array<i64: 32, 1>}, {pipeline_mode = #tpu.pipeline_mode<synchronous>, transform_indices = @transform_5, window_bounds = array<i64: 32, 1>}, {pipeline_mode = #tpu.pipeline_mode<synchronous>, transform_indices = @transform_6, window_bounds = array<i64: 32, 1>}, {transform_indices = @transform_7, window_bounds = array<i64: 1>}, {pipeline_mode = #tpu.pipeline_mode<synchronous>, transform_indices = @transform_8, window_bounds = array<i64: 1, 2>}]} {
    %c0_i32 = arith.constant 0 : i32
    %0 = arith.cmpi eq, %arg0, %c0_i32 : i32
    %1 = arith.extui %0 : i1 to i32
    %c0_i32_0 = arith.constant 0 : i32
    %2 = arith.cmpi ne, %1, %c0_i32_0 : i32
    scf.if %2 {
      %cst_38 = arith.constant 0.000000e+00 : f32
      %72 = vector.broadcast %cst_38 : f32 to vector<32x1xf32>
      %c0_39 = arith.constant 0 : index
      %c0_40 = arith.constant 0 : index
      %73 = vector.load %arg10[%c0_39, %c0_40] : memref<32x1xf32, #tpu.memory_space<vmem>>, vector<32x1xf32>
      tpu.vector_store %arg10[%c0_39, %c0_40], %72 {strides = array<i32>} : memref<32x1xf32, #tpu.memory_space<vmem>>, vector<32x1xf32>,
      %cst_41 = arith.constant 0.000000e+00 : f32
      %74 = vector.broadcast %cst_41 : f32 to vector<32x1xf32>
      %c0_42 = arith.constant 0 : index
      %c0_43 = arith.constant 0 : index
      %75 = vector.load %arg11[%c0_42, %c0_43] : memref<32x1xf32, #tpu.memory_space<vmem>>, vector<32x1xf32>
      tpu.vector_store %arg11[%c0_42, %c0_43], %74 {strides = array<i32>} : memref<32x1xf32, #tpu.memory_space<vmem>>, vector<32x1xf32>,
      %cst_44 = arith.constant 0.000000e+00 : f32
      %76 = vector.broadcast %cst_44 : f32 to vector<32x2xf32>
      %c0_45 = arith.constant 0 : index
      %c0_46 = arith.constant 0 : index
      %77 = vector.load %arg12[%c0_45, %c0_46] : memref<32x2xf32, #tpu.memory_space<vmem>>, vector<32x2xf32>
      tpu.vector_store %arg12[%c0_45, %c0_46], %76 {strides = array<i32>} : memref<32x2xf32, #tpu.memory_space<vmem>>, vector<32x2xf32>,
    } else {
    }
    %c0 = arith.constant 0 : index
    %c0_1 = arith.constant 0 : index
    %3 = vector.load %arg2[%c0, %c0_1] : memref<32x128xf32, #tpu.memory_space<vmem>>, vector<32x128xf32>
    %c0_2 = arith.constant 0 : index
    %c0_3 = arith.constant 0 : index
    %4 = vector.load %arg3[%c0_2, %c0_3] : memref<32x9xbf16, #tpu.memory_space<vmem>>, vector<32x9xbf16>
    %c0_4 = arith.constant 0 : index
    %c0_5 = arith.constant 0 : index
    %5 = vector.load %arg4[%c0_4, %c0_5] : memref<32x1xf32, #tpu.memory_space<vmem>>, vector<32x1xf32>
    %6 = tpu.iota {dimensions = array<i32: 1>} : vector<1x2xi32>
    %cst = arith.constant 0.000000e+00 : f32
    %7 = vector.broadcast %cst : f32 to vector<32x1xf32>
    %cst_6 = arith.constant 0.000000e+00 : f32
    %8 = vector.broadcast %cst_6 : f32 to vector<32x1xf32>
    %cst_7 = arith.constant 0.000000e+00 : f32
    %9 = vector.broadcast %cst_7 : f32 to vector<32x2xf32>
    %c0_8 = arith.constant 0 : index
    %c0_9 = arith.constant 0 : index
    %c0_10 = arith.constant 0 : index
    %10 = vector.load %arg1[%c0_8, %c0_9, %c0_10] : memref<2x9x128xbf16, #tpu.memory_space<vmem>>, vector<1x9x128xbf16>
    %11 = vector.shape_cast %10 : vector<1x9x128xbf16> to vector<9x128xbf16>
    %cst_11 = arith.constant dense<0.000000e+00> : vector<32x128xf32>
    %12 = tpu.matmul %4, %11, %cst_11 {dimension_numbers = #tpu.dot_dimension_numbers<[1], [0], [0], [1], [0, 0, 1, 1], [], []>} : vector<32x9xbf16>, vector<9x128xbf16>, vector<32x128xf32> -> vector<32x128xf32>
    %13 = vector.broadcast %5 : vector<32x1xf32> to vector<32x128xf32>
    %14 = arith.addf %12, %13 : vector<32x128xf32>
    %cst_12 = arith.constant 0.000000e+00 : f32
    %15 = vector.broadcast %cst_12 : f32 to vector<32x128xf32>
    %16 = arith.maximumf %14, %15 : vector<32x128xf32>
    %cst_13 = arith.constant dense<0.000000e+00> : vector<32xf32>
    %17 = vector.multi_reduction <add>, %16, %cst_13 [1] : vector<32x128xf32> to vector<32xf32>
    %18 = vector.shape_cast %17 : vector<32xf32> to vector<32x1xf32>
    %19 = arith.addf %7, %18 : vector<32x1xf32>
    %20 = arith.mulf %16, %16 : vector<32x128xf32>
    %cst_14 = arith.constant dense<0.000000e+00> : vector<32xf32>
    %21 = vector.multi_reduction <add>, %20, %cst_14 [1] : vector<32x128xf32> to vector<32xf32>
    %22 = vector.shape_cast %21 : vector<32xf32> to vector<32x1xf32>
    %23 = arith.addf %8, %22 : vector<32x1xf32>
    %24 = arith.mulf %16, %3 : vector<32x128xf32>
    %cst_15 = arith.constant dense<0.000000e+00> : vector<32xf32>
    %25 = vector.multi_reduction <add>, %24, %cst_15 [1] : vector<32x128xf32> to vector<32xf32>
    %26 = vector.shape_cast %25 : vector<32xf32> to vector<32x1xf32>
    %c0_i32_16 = arith.constant 0 : i32
    %27 = vector.broadcast %c0_i32_16 : i32 to vector<1x2xi32>
    %28 = arith.cmpi eq, %6, %27 : vector<1x2xi32>
    %29 = arith.extui %28 : vector<1x2xi1> to vector<1x2xi32>
    %30 = arith.sitofp %29 : vector<1x2xi32> to vector<1x2xf32>
    %31 = vector.broadcast %26 : vector<32x1xf32> to vector<32x2xf32>
    %32 = vector.broadcast %30 : vector<1x2xf32> to vector<32x2xf32>
    %33 = arith.mulf %31, %32 : vector<32x2xf32>
    %34 = arith.addf %9, %33 : vector<32x2xf32>
    %c1 = arith.constant 1 : index
    %c0_17 = arith.constant 0 : index
    %c0_18 = arith.constant 0 : index
    %35 = vector.load %arg1[%c1, %c0_17, %c0_18] : memref<2x9x128xbf16, #tpu.memory_space<vmem>>, vector<1x9x128xbf16>
    %36 = vector.shape_cast %35 : vector<1x9x128xbf16> to vector<9x128xbf16>
    %cst_19 = arith.constant dense<0.000000e+00> : vector<32x128xf32>
    %37 = tpu.matmul %4, %36, %cst_19 {dimension_numbers = #tpu.dot_dimension_numbers<[1], [0], [0], [1], [0, 0, 1, 1], [], []>} : vector<32x9xbf16>, vector<9x128xbf16>, vector<32x128xf32> -> vector<32x128xf32>
    %38 = vector.broadcast %5 : vector<32x1xf32> to vector<32x128xf32>
    %39 = arith.addf %37, %38 : vector<32x128xf32>
    %cst_20 = arith.constant 0.000000e+00 : f32
    %40 = vector.broadcast %cst_20 : f32 to vector<32x128xf32>
    %41 = arith.maximumf %39, %40 : vector<32x128xf32>
    %cst_21 = arith.constant dense<0.000000e+00> : vector<32xf32>
    %42 = vector.multi_reduction <add>, %41, %cst_21 [1] : vector<32x128xf32> to vector<32xf32>
    %43 = vector.shape_cast %42 : vector<32xf32> to vector<32x1xf32>
    %44 = arith.addf %19, %43 : vector<32x1xf32>
    %45 = arith.mulf %41, %41 : vector<32x128xf32>
    %cst_22 = arith.constant dense<0.000000e+00> : vector<32xf32>
    %46 = vector.multi_reduction <add>, %45, %cst_22 [1] : vector<32x128xf32> to vector<32xf32>
    %47 = vector.shape_cast %46 : vector<32xf32> to vector<32x1xf32>
    %48 = arith.addf %23, %47 : vector<32x1xf32>
    %49 = arith.mulf %41, %3 : vector<32x128xf32>
    %cst_23 = arith.constant dense<0.000000e+00> : vector<32xf32>
    %50 = vector.multi_reduction <add>, %49, %cst_23 [1] : vector<32x128xf32> to vector<32xf32>
    %51 = vector.shape_cast %50 : vector<32xf32> to vector<32x1xf32>
    %c1_i32 = arith.constant 1 : i32
    %52 = vector.broadcast %c1_i32 : i32 to vector<1x2xi32>
    %53 = arith.cmpi eq, %6, %52 : vector<1x2xi32>
    %54 = arith.extui %53 : vector<1x2xi1> to vector<1x2xi32>
    %55 = arith.sitofp %54 : vector<1x2xi32> to vector<1x2xf32>
    %56 = vector.broadcast %51 : vector<32x1xf32> to vector<32x2xf32>
    %57 = vector.broadcast %55 : vector<1x2xf32> to vector<32x2xf32>
    %58 = arith.mulf %56, %57 : vector<32x2xf32>
    %59 = arith.addf %34, %58 : vector<32x2xf32>
    %c0_24 = arith.constant 0 : index
    %c0_25 = arith.constant 0 : index
    %60 = vector.load %arg10[%c0_24, %c0_25] : memref<32x1xf32, #tpu.memory_space<vmem>>, vector<32x1xf32>
    %61 = arith.addf %60, %44 : vector<32x1xf32>
    %c0_26 = arith.constant 0 : index
    %c0_27 = arith.constant 0 : index
    %62 = vector.load %arg10[%c0_26, %c0_27] : memref<32x1xf32, #tpu.memory_space<vmem>>, vector<32x1xf32>
    tpu.vector_store %arg10[%c0_26, %c0_27], %61 {strides = array<i32>} : memref<32x1xf32, #tpu.memory_space<vmem>>, vector<32x1xf32>,
    %c0_28 = arith.constant 0 : index
    %c0_29 = arith.constant 0 : index
    %63 = vector.load %arg11[%c0_28, %c0_29] : memref<32x1xf32, #tpu.memory_space<vmem>>, vector<32x1xf32>
    %64 = arith.addf %63, %48 : vector<32x1xf32>
    %c0_30 = arith.constant 0 : index
    %c0_31 = arith.constant 0 : index
    %65 = vector.load %arg11[%c0_30, %c0_31] : memref<32x1xf32, #tpu.memory_space<vmem>>, vector<32x1xf32>
    tpu.vector_store %arg11[%c0_30, %c0_31], %64 {strides = array<i32>} : memref<32x1xf32, #tpu.memory_space<vmem>>, vector<32x1xf32>,
    %c0_32 = arith.constant 0 : index
    %c0_33 = arith.constant 0 : index
    %66 = vector.load %arg12[%c0_32, %c0_33] : memref<32x2xf32, #tpu.memory_space<vmem>>, vector<32x2xf32>
    %67 = arith.addf %66, %59 : vector<32x2xf32>
    %c0_34 = arith.constant 0 : index
    %c0_35 = arith.constant 0 : index
    %68 = vector.load %arg12[%c0_34, %c0_35] : memref<32x2xf32, #tpu.memory_space<vmem>>, vector<32x2xf32>
    tpu.vector_store %arg12[%c0_34, %c0_35], %67 {strides = array<i32>} : memref<32x2xf32, #tpu.memory_space<vmem>>, vector<32x2xf32>,
    %c1_i32_36 = arith.constant 1 : i32
    %69 = arith.cmpi eq, %arg0, %c1_i32_36 : i32
    %70 = arith.extui %69 : i1 to i32
    %c0_i32_37 = arith.constant 0 : i32
    %71 = arith.cmpi ne, %70, %c0_i32_37 : i32
    scf.if %71 {
      %c0_38 = arith.constant 0 : index
      %c0_39 = arith.constant 0 : index
      %72 = vector.load %arg10[%c0_38, %c0_39] : memref<32x1xf32, #tpu.memory_space<vmem>>, vector<32x1xf32>
      %cst_40 = arith.constant 0.001953125 : f32
      %73 = vector.broadcast %cst_40 : f32 to vector<32x1xf32>
      %74 = arith.mulf %72, %73 : vector<32x1xf32>
      %c0_41 = arith.constant 0 : index
      %c0_42 = arith.constant 0 : index
      %75 = vector.load %arg11[%c0_41, %c0_42] : memref<32x1xf32, #tpu.memory_space<vmem>>, vector<32x1xf32>
      %cst_43 = arith.constant 0.001953125 : f32
      %76 = vector.broadcast %cst_43 : f32 to vector<32x1xf32>
      %77 = arith.mulf %75, %76 : vector<32x1xf32>
      %78 = arith.mulf %74, %74 : vector<32x1xf32>
      %79 = arith.subf %77, %78 : vector<32x1xf32>
      %cst_44 = arith.constant 0.000000e+00 : f32
      %80 = vector.broadcast %cst_44 : f32 to vector<32x1xf32>
      %81 = arith.maximumf %79, %80 : vector<32x1xf32>
      %c0_45 = arith.constant 0 : index
      %c0_46 = arith.constant 0 : index
      %82 = vector.load %arg5[%c0_45, %c0_46] : memref<32x1xf32, #tpu.memory_space<vmem>>, vector<32x1xf32>
      %cst_47 = arith.constant 9.99999974E-6 : f32
      %83 = vector.broadcast %cst_47 : f32 to vector<32x1xf32>
      %84 = arith.addf %81, %83 : vector<32x1xf32>
      %85 = math.rsqrt %84 : vector<32x1xf32>
      %86 = arith.mulf %82, %85 : vector<32x1xf32>
      %c0_48 = arith.constant 0 : index
      %c0_49 = arith.constant 0 : index
      %87 = vector.load %arg6[%c0_48, %c0_49] : memref<32x1xf32, #tpu.memory_space<vmem>>, vector<32x1xf32>
      %88 = arith.mulf %74, %86 : vector<32x1xf32>
      %89 = arith.subf %87, %88 : vector<32x1xf32>
      %c0_50 = arith.constant 0 : index
      %c0_51 = arith.constant 0 : index
      %90 = vector.load %arg12[%c0_50, %c0_51] : memref<32x2xf32, #tpu.memory_space<vmem>>, vector<32x2xf32>
      %91 = vector.broadcast %86 : vector<32x1xf32> to vector<32x2xf32>
      %92 = arith.mulf %91, %90 : vector<32x2xf32>
      %cst_52 = arith.constant dense<0.000000e+00> : vector<2xf32>
      %93 = vector.multi_reduction <add>, %92, %cst_52 [0] : vector<32x2xf32> to vector<2xf32>
      %94 = vector.shape_cast %93 : vector<2xf32> to vector<1x2xf32>
      %c0_53 = arith.constant 0 : index
      %c0_54 = arith.constant 0 : index
      %95 = vector.load %arg7[%c0_53, %c0_54] : memref<32x1xf32, #tpu.memory_space<vmem>>, vector<32x1xf32>
      %96 = arith.mulf %89, %95 : vector<32x1xf32>
      %cst_55 = arith.constant dense<0.000000e+00> : vector<1xf32>
      %97 = vector.multi_reduction <add>, %96, %cst_55 [0] : vector<32x1xf32> to vector<1xf32>
      %98 = vector.shape_cast %97 : vector<1xf32> to vector<1x1xf32>
      %99 = vector.broadcast %98 : vector<1x1xf32> to vector<1x2xf32>
      %100 = arith.addf %94, %99 : vector<1x2xf32>
      %c0_56 = arith.constant 0 : index
      %101 = memref.load %arg8[%c0_56] : memref<1xf32, #tpu.memory_space<smem>>
      %102 = vector.broadcast %101 : f32 to vector<1x2xf32>
      %103 = arith.addf %100, %102 : vector<1x2xf32>
      %cst_57 = arith.constant 0.000000e+00 : f32
      %104 = vector.broadcast %cst_57 : f32 to vector<1x2xf32>
      %105 = arith.subf %104, %103 : vector<1x2xf32>
      %106 = math.exp %105 : vector<1x2xf32>
      %cst_58 = arith.constant 1.000000e+00 : f32
      %107 = vector.broadcast %cst_58 : f32 to vector<1x2xf32>
      %108 = arith.addf %107, %106 : vector<1x2xf32>
      %cst_59 = arith.constant 1.000000e+00 : f32
      %109 = vector.broadcast %cst_59 : f32 to vector<1x2xf32>
      %110 = arith.divf %109, %108 : vector<1x2xf32>
      %c0_60 = arith.constant 0 : index
      %c0_61 = arith.constant 0 : index
      %111 = vector.load %arg9[%c0_60, %c0_61] : memref<1x2xf32, #tpu.memory_space<vmem>>, vector<1x2xf32>
      tpu.vector_store %arg9[%c0_60, %c0_61], %110 {strides = array<i32>} : memref<1x2xf32, #tpu.memory_space<vmem>>, vector<1x2xf32>,
    } else {
    }
    return
  }
  func.func @transform_0(%arg0: i32) -> (i32, i32, i32) {
    %c0_i32 = arith.constant 0 : i32
    %c0_i32_0 = arith.constant 0 : i32
    %c0_i32_1 = arith.constant 0 : i32
    return %c0_i32, %c0_i32_0, %arg0 : i32, i32, i32
  }
  func.func @transform_1(%arg0: i32) -> (i32, i32) {
    %c0_i32 = arith.constant 0 : i32
    %c0_i32_0 = arith.constant 0 : i32
    return %c0_i32, %arg0 : i32, i32
  }
  func.func @transform_2(%arg0: i32) -> (i32, i32) {
    %c0_i32 = arith.constant 0 : i32
    %c0_i32_0 = arith.constant 0 : i32
    %c0_i32_1 = arith.constant 0 : i32
    return %c0_i32, %c0_i32_0 : i32, i32
  }
  func.func @transform_3(%arg0: i32) -> (i32, i32) {
    %c0_i32 = arith.constant 0 : i32
    %c0_i32_0 = arith.constant 0 : i32
    %c0_i32_1 = arith.constant 0 : i32
    return %c0_i32, %c0_i32_0 : i32, i32
  }
  func.func @transform_4(%arg0: i32) -> (i32, i32) {
    %c0_i32 = arith.constant 0 : i32
    %c0_i32_0 = arith.constant 0 : i32
    %c0_i32_1 = arith.constant 0 : i32
    return %c0_i32, %c0_i32_0 : i32, i32
  }
  func.func @transform_5(%arg0: i32) -> (i32, i32) {
    %c0_i32 = arith.constant 0 : i32
    %c0_i32_0 = arith.constant 0 : i32
    %c0_i32_1 = arith.constant 0 : i32
    return %c0_i32, %c0_i32_0 : i32, i32
  }
  func.func @transform_6(%arg0: i32) -> (i32, i32) {
    %c0_i32 = arith.constant 0 : i32
    %c0_i32_0 = arith.constant 0 : i32
    %c0_i32_1 = arith.constant 0 : i32
    return %c0_i32, %c0_i32_0 : i32, i32
  }
  func.func @transform_7(%arg0: i32) -> i32 {
    %c0_i32 = arith.constant 0 : i32
    %c0_i32_0 = arith.constant 0 : i32
    return %c0_i32 : i32
  }
  func.func @transform_8(%arg0: i32) -> (i32, i32) {
    %c0_i32 = arith.constant 0 : i32
    %c0_i32_0 = arith.constant 0 : i32
    %c0_i32_1 = arith.constant 0 : i32
    return %c0_i32, %c0_i32_0 : i32, i32
  }
}

</mosaic_0001>

<bundles_post_ra>
// kernel: convnet1_forward.1
= control target key start
LH: loop header
LB: loop body
LE: loop exit
PB: predicated region body
PF: predicated region fallthrough
CT: control target
= control target key end

     0   :  { %s1343_s0 = inlined_call_operand.vmem [shape: bf16[2,9,256], index: 0, kind: input, shape index: {}]   ;;  %s1344_s1 = inlined_call_operand.vmem [shape: f32[32,256], index: 1, kind: input, shape index: {}]   ;;  %s1345_s2 = inlined_call_operand.vmem [shape: bf16[32,9], index: 2, kind: input, shape index: {}]   ;;  %s1346_s3 = inlined_call_operand.vmem [shape: f32[32,1], index: 3, kind: input, shape index: {}]   ;;  %s1347_s4 = inlined_call_operand.vmem [shape: f32[32,1], index: 4, kind: input, shape index: {}]   ;;  %s1348_s5 = inlined_call_operand.vmem [shape: f32[32,1], index: 5, kind: input, shape index: {}]   ;;  %s1349_s6 = inlined_call_operand.vmem [shape: f32[32,1], index: 6, kind: input, shape index: {}]   ;;  %s1350_s7 = inlined_call_operand.<no memory space> [shape: f32[1], index: 7, kind: input, shape index: {}]   ;;  %s1351_s8 = inlined_call_operand.hbm [shape: f32[1,2], index: 8, kind: output, shape index: {}]  }
   0x1   :  { %13 = sst [smem:[#allocation5]] %s1350_s7 }
   0x2   :  { %14 = vsyncpa [#allocation9], 0  ;;  %s1172_s29 = smov 0   ;;  %s1174_s30 = smov 0  }
   0x3   :  { %s1176_s9 = smov 0  }
   0x4 LB: > { %s1188_s7 = sadd.s32 4294967295, %s1116_s9   ;;  %s1191_s10 = sadd.s32 1, %s1116_s9   ;;  %s1116_s9 = sphi %s1176_s9, %s1355_s9   ;;  %s1112_s30 = sphi %s1174_s30, %s1354_s30   ;;  %s1108_s29 = sphi %s1172_s29, %s1353_s29  }
   0x5   : > { %s24_s11 = ssub.s32 %s1116_s9, %s1191_s10  ;;  %s27_s12 = sadd.s32 1, %s1112_s30 }
   0x6   : > { %p25_p0 = scmp.eq.s32.totalorder %s24_s11, 0  ;;  %p34_p1 = scmp.ne.s32.totalorder %s1112_s30, %s1108_s29 }
   0x7   : > { %p35_p2 = scmp.eq.s32.totalorder %s1116_s9, 0  ;;  %p964_p4 = scmp.ge.s32.totalorder %s1116_s9, 2 }
   0x8   : > { %s1200_s13 = scalar_select %p25_p0, %s1112_s30, %s27_s12  }
   0x9   : > { %p1202_p3 = por %p35_p2, %p34_p1  ;;  %251 = sbr.rel (%p964_p4) target bundleno = 30 (0x1e), region = 40 }
  0x10   : > { %254 = sbr.rel (!%p1202_p3) target bundleno = 23 (0x17), region = 44  ;;  %s256_s15 = sand.u32 (%p1202_p3), 1, %s1112_s30  }
  0x11   : > { %s966_s16 = sshll.u32 (%p1202_p3), %s1116_s9, 2  ;;  %s965_s17 = sshll.u32 (%p1202_p3), %s256_s15, 4 }
  0x12   : > { %s260_s20 = scalar_lea.vmem (%p1202_p3), %s1343_s0, %s966_s16  ;;  %s258_s21 = scalar_lea.vmem (%p1202_p3), [#allocation6], %s965_s17 }
  0x13   : > { %v276_v0 = vld [vmem:[%s260_s20] sm:$0xf] (%p1202_p3)  ;;  %v278_v1 = vld [vmem:[%s260_s20 + $0x8] sm:$0xf] (%p1202_p3)  ;;  %v280_v2 = vld [vmem:[%s260_s20 + $0x10] sm:$0xf] (%p1202_p3) }
  0x14   : > { %277 = vst [vmem:[%s258_s21] sm:$0xf] (%p1202_p3), %v276_v0  ;;  %279 = vst [vmem:[%s258_s21 + $0x4] sm:$0xf] (%p1202_p3), %v278_v1  ;;  %v282_v3 = vld [vmem:[%s260_s20 + $0x18] sm:$0xf] (%p1202_p3) }
  0x15   : > { %281 = vst [vmem:[%s258_s21 + $0x8] sm:$0xf] (%p1202_p3), %v280_v2  ;;  %283 = vst [vmem:[%s258_s21 + $0xc] sm:$0xf] (%p1202_p3), %v282_v3 }
  0x17 PF: > { %314 = sbr.rel (!%p1202_p3) target bundleno = 30 (0x1e), region = 85  ;;  %s316_s22 = sand.u32 (%p1202_p3), 1, %s1112_s30  }
  0x18   : > { %s968_s23 = sshll.u32 (%p1202_p3), %s1116_s9, 3  ;;  %s967_s24 = sshll.u32 (%p1202_p3), %s316_s22, 5 }
  0x19   : > { %s320_s27 = scalar_lea.vmem (%p1202_p3), %s1344_s1, %s968_s23  ;;  %s318_s28 = scalar_lea.vmem (%p1202_p3), [#allocation7], %s967_s24 }
  0x1a   : > { %v354_v4 = vld [vmem:[%s320_s27] sm:$0xff] (%p1202_p3)  ;;  %v356_v5 = vld [vmem:[%s320_s27 + $0x10] sm:$0xff] (%p1202_p3) }
  0x1b   : > { %v358_v6 = vld [vmem:[%s320_s27 + $0x20] sm:$0xff] (%p1202_p3)  ;;  %355 = vst [vmem:[%s318_s28] sm:$0xff] (%p1202_p3), %v354_v4  ;;  %357 = vst [vmem:[%s318_s28 + $0x8] sm:$0xff] (%p1202_p3), %v356_v5  ;;  %v360_v7 = vld [vmem:[%s320_s27 + $0x30] sm:$0xff] (%p1202_p3) }
  0x1c   : > { %359 = vst [vmem:[%s318_s28 + $0x10] sm:$0xff] (%p1202_p3), %v358_v6  ;;  %361 = vst [vmem:[%s318_s28 + $0x18] sm:$0xff] (%p1202_p3), %v360_v7 }
  0x1e PF: > { %p969_p5 = scmp.ge.s32.totalorder %s1116_s9, 1  ;;  %p366_p6 = scmp.lt.s32.totalorder %s1116_s9, 3 }
  0x20   : > { %p367_p7 = pnand %p969_p5, %p366_p6 }
  0x21   : > { %s373_s11 = sand.u32 (!%p367_p7), 1, %s1108_s29   ;;  %p972_p8 = scmp.ne.s32.totalorder (!%p367_p7), %s1188_s7, 0 }
  0x22   : > { %370 = sbr.rel (%p367_p7) target bundleno = 710 (0x2c6), region = 123  ;;  %s970_s12 = sshll.u32 (!%p367_p7), %s373_s11, 4 }
  0x23   : > { %s971_s14 = sshll.u32 (!%p367_p7), %s373_s11, 5  ;;  %s375_s15 = scalar_lea.vmem (!%p367_p7), [#allocation6], %s970_s12 }
  0x24   : > { %s1224_s16 = scalar_lea.vmem (!%p367_p7), [#allocation7], %s971_s14 }
  0x29   : > { %416 = sbr.rel (%p972_p8) target bundleno = 48 (0x30), region = 135  ;;  %vm417_vm0 = vcmask (!%p972_p8), 7168   ;;  %vm426_vm1 = vcmask (!%p972_p8), 15360   ;;  %v1118_v8 = vmov (!%p972_p8), 0.0  }
  0x2a   : > { %418 = vst.msk [vmem:[#allocation2] sm:$0xff] (!%p972_p8), %vm417_vm0, %v1118_v8  ;;  %419 = vst.msk [vmem:[#allocation2 + $0x8] sm:$0xff] (!%p972_p8), %vm417_vm0, %v1118_v8 }
  0x2b   : > { %420 = vst.msk [vmem:[#allocation2 + $0x10] sm:$0xff] (!%p972_p8), %vm417_vm0, %v1118_v8  ;;  %421 = vst.msk [vmem:[#allocation2 + $0x18] sm:$0xff] (!%p972_p8), %vm417_vm0, %v1118_v8 }
  0x2c   : > { %422 = vst.msk [vmem:[#allocation3] sm:$0xff] (!%p972_p8), %vm417_vm0, %v1118_v8  ;;  %423 = vst.msk [vmem:[#allocation3 + $0x8] sm:$0xff] (!%p972_p8), %vm417_vm0, %v1118_v8 }
  0x2d   : > { %424 = vst.msk [vmem:[#allocation3 + $0x10] sm:$0xff] (!%p972_p8), %vm417_vm0, %v1118_v8  ;;  %425 = vst.msk [vmem:[#allocation3 + $0x18] sm:$0xff] (!%p972_p8), %vm417_vm0, %v1118_v8 }
  0x2e   : > { %427 = vst.msk [vmem:[#allocation4] sm:$0xff] (!%p972_p8), %vm426_vm1, %v1118_v8  ;;  %428 = vst.msk [vmem:[#allocation4 + $0x8] sm:$0xff] (!%p972_p8), %vm426_vm1, %v1118_v8 }
  0x2f   : > { %429 = vst.msk [vmem:[#allocation4 + $0x10] sm:$0xff] (!%p972_p8), %vm426_vm1, %v1118_v8  ;;  %430 = vst.msk [vmem:[#allocation4 + $0x18] sm:$0xff] (!%p972_p8), %vm426_vm1, %v1118_v8 }
  0x30 PF: > { %v1046_v9 = vld [vmem:[%s375_s15] sm:$0x1f]   ;;  %vm489_vm2 = vcmask 1043456   ;;  %vm490_vm3 = vcmask 1044480   ;;  %v1119_v11 = vmov 65535   ;;  %vm482_vm4 = vcmask 72704  }
  0x31   : > { %v1048_v10 = vld [vmem:[%s1345_s2] sm:$0xff]   ;;  %v491_v12 = vsel %vm489_vm2, 4294967295, %v1119_v11  ;;  %v1047_v13 = vld [vmem:[%s375_s15 + $0x8] sm:$0x1f]   ;;  %v1120_v17 = vmov 0   ;;  %v441_v18 = vld [vmem:[%s1346_s3 + $0x10] sm:$0xff] }
  0x32   : > { %v492_v14 = vsel %vm490_vm3, %v491_v12, 0  ;;  %998 = vmatprep.mubr.msk.bf16.mxu0 %vm482_vm4, %v1048_v10  ;;  %1004 = vmatprep.mubr.msk.bf16.mxu1 %vm482_vm4, %v1048_v10  ;;  %v439_v19 = vld [vmem:[%s1346_s3] sm:$0xff]  ;;  %v1049_v20 = vld [vmem:[%s1345_s2 + $0x8] sm:$0xff]   ;;  %v442_v21 = vld [vmem:[%s1346_s3 + $0x18] sm:$0xff]  ;;  %vm723_vm5 = vcmask 7168   ;;  %vm748_vm8 = vcmask 15360  }
  0x33   : > { %v494_v15 = vand.u32 %v1046_v9, %v492_v14  ;;  %v609_v16 = vand.u32 %v1047_v13, %v492_v14  ;;  %1045 = vset.pattern.permute.xlu1 %v1120_v17  ;;  %1044 = vset.pattern.permute.xlu0 %v1120_v17  ;;  %v440_v22 = vld [vmem:[%s1346_s3 + $0x8] sm:$0xff]  ;;  %v433_v31 = vld [vmem:[%s1224_s16 + $0x10] sm:$0xff]  ;;  %v431_v48 = vld [vmem:[%s1224_s16] sm:$0xff]  ;;  %v443_v9 = vlaneseq  ;;  %p985_p9 = scmp.ne.s32.totalorder %s1188_s7, 1 }
  0x34   : > { %459 = vperm.xlu1 %1045, %v441_v18   ;;  %449 = vperm.xlu0 %1044, %v439_v19   ;;  %v434_v57 = vld [vmem:[%s1224_s16 + $0x18] sm:$0xff]  ;;  %v432_v63 = vld [vmem:[%s1224_s16 + $0x8] sm:$0xff]  ;;  %v717_v10 = vld [vmem:[#allocation2 + $0x10] sm:$0xff]  ;;  %s881_s15 = sld [smem:[#allocation5]] (!%p985_p9)  ;;  %vm890_vm9 = vcmask (!%p985_p9), 8192  }
  0x35   : > { %996 = vmatprep.subr.bf16.mxu0 %v494_v15  ;;  %1002 = vmatprep.subr.bf16.mxu1 %v609_v16  ;;  %v444_v14 = vand.u32 127, %v443_v9  ;;  %v718_v17 = vld [vmem:[#allocation2 + $0x18] sm:$0xff] }
  0x36   : > { %997 = vmatpush3.bf16.msra.mxu0 %v494_v15  ;;  %1003 = vmatpush3.bf16.msra.mxu1 %v609_v16 }
  0x37   : > { %vm589_vm6 = vcmp.eq.s32.totalorder %v444_v14, 0  ;;  %vm704_vm7 = vcmp.eq.s32.totalorder %v444_v14, 1 }
  0x38   : > { %464 = vperm.xlu1 %1045, %v442_v21   ;;  %454 = vperm.xlu0 %1044, %v440_v22  }
  0x39   : > { %999 = vmatmul.mubr.msk.bf16.vlgmr.msra.gmra.mrb[0].mxu0 %vm482_vm4, %v1049_v20  ;;  %1005 = vmatmul.mubr.msk.bf16.vlgmr.msra.gmra.mrb[0].mxu1 %vm482_vm4, %v1049_v20  ;;  %v715_v20 = vld [vmem:[#allocation2] sm:$0xff] }
  0xb3   : > { %v460_v23 = vpop.permute.xlu1 %459  ;;  %v450_v39 = vpop.permute.xlu0 %449 }
  0xb7   : > { %v465_v36 = vpop.permute.xlu1 %464  ;;  %v455_v47 = vpop.permute.xlu0 %454 }
 0x10c   : > { %v1000_v24 = vpop.f32.mrb[0].mxu0  ;;  %v1006_v25 = vpop.f32.mrb[0].mxu1 }
 0x10d   : > { %v539_v26 = vadd.f32 %v1000_v24, %v460_v23  ;;  %v530_v27 = vpop.f32.mrb[1].mxu0  ;;  %v645_v28 = vpop.f32.mrb[1].mxu1  ;;  %v654_v33 = vadd.f32 %v1006_v25, %v460_v23  ;;  %v1121_v24 = vmov 0.0  }
 0x10e   : > { %v1001_v29 = vpop.f32.mrb[2].mxu0  ;;  %v1007_v30 = vpop.f32.mrb[2].mxu1  ;;  %v531_v41 = vadd.f32 %v530_v27, %v450_v39  ;;  %v646_v45 = vadd.f32 %v645_v28, %v450_v39  ;;  %v978_v25 = vsel %vm589_vm6, 1.0, %v1121_v24  ;;  %v984_v27 = vsel %vm704_vm7, 1.0, %v1121_v24 }
 0x10f   : > { %v547_v32 = vmax.f32 %v539_v26, 0.0  ;;  %v533_v34 = vpop.f32.mrb[3].mxu0  ;;  %v648_v35 = vpop.f32.mrb[3].mxu1  ;;  %v542_v37 = vadd.f32 %v1001_v29, %v465_v36  ;;  %v662_v40 = vmax.f32 %v654_v33, 0.0  ;;  %v657_v43 = vadd.f32 %v1007_v30, %v465_v36 }
 0x110   : > { %v545_v44 = vmax.f32 %v531_v41, 0.0  ;;  %v660_v49 = vmax.f32 %v646_v45, 0.0  ;;  %v534_v50 = vadd.f32 %v533_v34, %v455_v47  ;;  %v649_v54 = vadd.f32 %v648_v35, %v455_v47 }
 0x111   : > { %553 = vadd.xlane.f32.xlu1 %v547_v32  ;;  %v579_v38 = vmul.f32 %v547_v32, %v433_v31  ;;  %v548_v42 = vmax.f32 %v542_v37, 0.0  ;;  %v663_v46 = vmax.f32 %v657_v43, 0.0  ;;  %v694_v52 = vmul.f32 %v662_v40, %v433_v31  ;;  %v716_v37 = vld [vmem:[#allocation2 + $0x8] sm:$0xff] }
 0x112   : > { %v577_v51 = vmul.f32 %v545_v44, %v431_v48  ;;  %v546_v53 = vmax.f32 %v534_v50, 0.0  ;;  %v563_v55 = vmul.f32 %v547_v32, %v547_v32  ;;  %v661_v56 = vmax.f32 %v649_v54, 0.0  ;;  %v742_v32 = vld [vmem:[#allocation4 + $0x10] sm:$0xff] }
 0x113   : > { %585 = vadd.xlane.f32.xlu0 %v579_v38  ;;  %v692_v58 = vmul.f32 %v660_v49, %v431_v48  ;;  %v580_v59 = vmul.f32 %v548_v42, %v434_v57  ;;  %v561_v60 = vmul.f32 %v545_v44, %v545_v44  ;;  %v695_v61 = vmul.f32 %v663_v46, %v434_v57 }
 0x114   : > { %v676_v62 = vmul.f32 %v660_v49, %v660_v49  ;;  %v564_v0 = vmul.f32 %v548_v42, %v548_v42  ;;  %v578_v1 = vmul.f32 %v546_v53, %v432_v63  ;;  %v693_v2 = vmul.f32 %v661_v56, %v432_v63 }
 0x115   : > { %668 = vadd.xlane.f32.xlu1 %v662_v40  ;;  %v678_v3 = vmul.f32 %v662_v40, %v662_v40  ;;  %v562_v4 = vmul.f32 %v546_v53, %v546_v53  ;;  %v677_v5 = vmul.f32 %v661_v56, %v661_v56  ;;  %v679_v6 = vmul.f32 %v663_v46, %v663_v46 }
 0x117   : > { %555 = vadd.xlane.f32.xlu0 %v548_v42 }
 0x119   : > { %549 = vadd.xlane.f32.xlu1 %v545_v44  ;;  %v740_v44 = vld [vmem:[#allocation4] sm:$0xff] }
 0x11b   : > { %670 = vadd.xlane.f32.xlu0 %v663_v46 }
 0x11d   : > { %664 = vadd.xlane.f32.xlu1 %v660_v49 }
 0x11f   : > { %581 = vadd.xlane.f32.xlu0 %v577_v51 }
 0x121   : > { %700 = vadd.xlane.f32.xlu1 %v694_v52  ;;  %v743_v52 = vld [vmem:[#allocation4 + $0x18] sm:$0xff] }
 0x123   : > { %551 = vadd.xlane.f32.xlu0 %v546_v53  ;;  %v728_v53 = vld [vmem:[#allocation3] sm:$0xff] }
 0x125   : > { %569 = vadd.xlane.f32.xlu1 %v563_v55 }
 0x127   : > { %666 = vadd.xlane.f32.xlu0 %v661_v56 }
 0x129   : > { %696 = vadd.xlane.f32.xlu1 %v692_v58 }
 0x12b   : > { %587 = vadd.xlane.f32.xlu0 %v580_v59 }
 0x12d   : > { %565 = vadd.xlane.f32.xlu1 %v561_v60 }
 0x12f   : > { %702 = vadd.xlane.f32.xlu0 %v695_v61 }
 0x131   : > { %680 = vadd.xlane.f32.xlu1 %v676_v62 }
 0x133   : > { %571 = vadd.xlane.f32.xlu0 %v564_v0  ;;  %v741_v0 = vld [vmem:[#allocation4 + $0x8] sm:$0xff] }
 0x135   : > { %583 = vadd.xlane.f32.xlu1 %v578_v1  ;;  %v730_v1 = vld [vmem:[#allocation3 + $0x10] sm:$0xff] }
 0x137   : > { %698 = vadd.xlane.f32.xlu0 %v693_v2 }
 0x139   : > { %684 = vadd.xlane.f32.xlu1 %v678_v3 }
 0x13b   : > { %567 = vadd.xlane.f32.xlu0 %v562_v4 }
 0x13f   : > { %682 = vadd.xlane.f32.xlu0 %v677_v5 }
 0x143   : > { %686 = vadd.xlane.f32.xlu0 %v679_v6 }
 0x19e   : > { %v554_v7 = vpop.xlane.xlu1 %553 }
 0x1a0   : > { %v586_v8 = vpop.xlane.xlu0 %585 }
 0x1a1   : > { %v594_v30 = vmul.f32 %v978_v25, %v586_v8  ;;  %v729_v8 = vld [vmem:[#allocation3 + $0x8] sm:$0xff] }
 0x1a2   : > { %v669_v11 = vpop.xlane.xlu1 %668 }
 0x1a3   : > { %v674_v12 = vadd.f32 %v669_v11, %v554_v7 }
 0x1a4   : > { %v556_v13 = vpop.xlane.xlu0 %555 }
 0x1a5   : > { %v721_v15 = vadd.f32 %v717_v10, %v674_v12  ;;  %v731_v12 = vld [vmem:[#allocation3 + $0x18] sm:$0xff] }
 0x1a6   : > { %v550_v16 = vpop.xlane.xlu1 %549 }
 0x1a7   : > { %726 = vst.msk [vmem:[#allocation2 + $0x10] sm:$0xff] %vm723_vm5, %v721_v15 }
 0x1a8   : > { %v671_v18 = vpop.xlane.xlu0 %670 }
 0x1a9   : > { %v675_v19 = vadd.f32 %v671_v18, %v556_v13  ;;  %v1122_v18 = vmov (!%p985_p9), 0  }
 0x1aa   : > { %v665_v21 = vpop.xlane.xlu1 %664  ;;  %1051 = vset.pattern.permute.xlu1 (!%p985_p9), %v1122_v18  ;;  %1050 = vset.pattern.permute.xlu0 (!%p985_p9), %v1122_v18 }
 0x1ab   : > { %v722_v22 = vadd.f32 %v718_v17, %v675_v19  ;;  %v672_v23 = vadd.f32 %v665_v21, %v550_v16 }
 0x1ac   : > { %v582_v26 = vpop.xlane.xlu0 %581 }
 0x1ad   : > { %727 = vst.msk [vmem:[#allocation2 + $0x18] sm:$0xff] %vm723_vm5, %v722_v22  ;;  %v719_v28 = vadd.f32 %v715_v20, %v672_v23  ;;  %v592_v41 = vmul.f32 %v978_v25, %v582_v26 }
 0x1ae   : > { %v701_v29 = vpop.xlane.xlu1 %700  ;;  %v759_v16 = vld [vmem:[#allocation2 + $0x10] sm:$0xff] (!%p985_p9) }
 0x1af   : > { %724 = vst.msk [vmem:[#allocation2] sm:$0xff] %vm723_vm5, %v719_v28  ;;  %v709_v31 = vmul.f32 %v984_v27, %v701_v29  ;;  %v763_v19 = vmul.f32 (!%p985_p9), 0.001953125, %v759_v16 }
 0x1b0   : > { %v552_v33 = vpop.xlane.xlu0 %551 }
 0x1b1   : > { %v713_v34 = vadd.f32 %v709_v31, %v594_v30  ;;  %v775_v24 = vmul.f32 (!%p985_p9), %v763_v19, %v763_v19 }
 0x1b2   : > { %v570_v35 = vpop.xlane.xlu1 %569 }
 0x1b3   : > { %v746_v36 = vadd.f32 %v742_v32, %v713_v34 }
 0x1b4   : > { %v667_v38 = vpop.xlane.xlu0 %666  ;;  %v760_v26 = vld [vmem:[#allocation2 + $0x18] sm:$0xff] (!%p985_p9) }
 0x1b5   : > { %751 = vst.msk [vmem:[#allocation4 + $0x10] sm:$0xff] %vm748_vm8, %v746_v36  ;;  %v673_v39 = vadd.f32 %v667_v38, %v552_v33  ;;  %v764_v29 = vmul.f32 (!%p985_p9), 0.001953125, %v760_v26 }
 0x1b6   : > { %v697_v40 = vpop.xlane.xlu1 %696  ;;  %v757_v21 = vld [vmem:[#allocation2] sm:$0xff] (!%p985_p9) }
 0x1b7   : > { %v720_v42 = vadd.f32 %v716_v37, %v673_v39  ;;  %v707_v43 = vmul.f32 %v984_v27, %v697_v40  ;;  %v761_v22 = vmul.f32 (!%p985_p9), 0.001953125, %v757_v21 }
 0x1b8   : > { %v588_v45 = vpop.xlane.xlu0 %587 }
 0x1b9   : > { %725 = vst.msk [vmem:[#allocation2 + $0x8] sm:$0xff] %vm723_vm5, %v720_v42  ;;  %v711_v46 = vadd.f32 %v707_v43, %v592_v41  ;;  %v595_v50 = vmul.f32 %v978_v25, %v588_v45  ;;  %v773_v28 = vmul.f32 (!%p985_p9), %v761_v22, %v761_v22 }
 0x1ba   : > { %v566_v47 = vpop.xlane.xlu1 %565 }
 0x1bb   : > { %v744_v48 = vadd.f32 %v740_v44, %v711_v46 }
 0x1bc   : > { %v703_v49 = vpop.xlane.xlu0 %702 }
 0x1bd   : > { %749 = vst.msk [vmem:[#allocation4] sm:$0xff] %vm748_vm8, %v744_v48  ;;  %v710_v51 = vmul.f32 %v984_v27, %v703_v49  ;;  %v787_v49 = vld [vmem:[%s1347_s4 + $0x10] sm:$0xff] (!%p985_p9) }
 0x1be   : > { %v681_v54 = vpop.xlane.xlu1 %680 }
 0x1bf   : > { %v714_v55 = vadd.f32 %v710_v51, %v595_v50  ;;  %v688_v56 = vadd.f32 %v681_v54, %v566_v47  ;;  %v785_v50 = vld [vmem:[%s1347_s4] sm:$0xff] (!%p985_p9)  ;;  %v788_v54 = vld [vmem:[%s1347_s4 + $0x18] sm:$0xff] (!%p985_p9) }
 0x1c0   : > { %v572_v57 = vpop.xlane.xlu0 %571  ;;  %v758_v32 = vld [vmem:[#allocation2 + $0x8] sm:$0xff] (!%p985_p9) }
 0x1c1   : > { %v747_v58 = vadd.f32 %v743_v52, %v714_v55  ;;  %v732_v59 = vadd.f32 %v728_v53, %v688_v56  ;;  %v762_v36 = vmul.f32 (!%p985_p9), 0.001953125, %v758_v32 }
 0x1c2   : > { %v584_v60 = vpop.xlane.xlu1 %583 }
 0x1c3   : > { %752 = vst.msk [vmem:[#allocation4 + $0x18] sm:$0xff] %vm748_vm8, %v747_v58  ;;  %v593_v62 = vmul.f32 %v978_v25, %v584_v60  ;;  %v774_v41 = vmul.f32 (!%p985_p9), %v762_v36, %v762_v36  ;;  %v786_v60 = vld [vmem:[%s1347_s4 + $0x8] sm:$0xff] (!%p985_p9) }
 0x1c4   : > { %736 = vst.msk [vmem:[#allocation3] sm:$0xff] %vm723_vm5, %v732_v59  ;;  %v699_v61 = vpop.xlane.xlu0 %698  ;;  %v801_v59 = vld [vmem:[%s1348_s5] sm:$0xff] (!%p985_p9) }
 0x1c5   : > { %v708_v63 = vmul.f32 %v984_v27, %v699_v61 }
 0x1c6   : > { %v685_v2 = vpop.xlane.xlu1 %684 }
 0x1c7   : > { %v712_v3 = vadd.f32 %v708_v63, %v593_v62  ;;  %v690_v4 = vadd.f32 %v685_v2, %v570_v35  ;;  %v776_v35 = vmul.f32 (!%p985_p9), %v764_v29, %v764_v29 }
 0x1c8   : > { %v568_v5 = vpop.xlane.xlu0 %567 }
 0x1c9   : > { %v745_v6 = vadd.f32 %v741_v0, %v712_v3  ;;  %v734_v7 = vadd.f32 %v730_v1, %v690_v4  ;;  %v854_v0 = vld [vmem:[%s1349_s6] sm:$0xff] (!%p985_p9)  ;;  %v804_v1 = vld [vmem:[%s1348_s5 + $0x18] sm:$0xff] (!%p985_p9) }
 0x1cb   : > { %750 = vst.msk [vmem:[#allocation4 + $0x8] sm:$0xff] %vm748_vm8, %v745_v6  ;;  %v765_v23 = vld [vmem:[#allocation3] sm:$0xff] (!%p985_p9)  ;;  %v856_v6 = vld [vmem:[%s1349_s6 + $0x10] sm:$0xff] (!%p985_p9) }
 0x1cc   : > { %738 = vst.msk [vmem:[#allocation3 + $0x10] sm:$0xff] %vm723_vm5, %v734_v7  ;;  %v683_v9 = vpop.xlane.xlu0 %682  ;;  %v769_v25 = vmul.f32 (!%p985_p9), 0.001953125, %v765_v23  ;;  %v802_v7 = vld [vmem:[%s1348_s5 + $0x8] sm:$0xff] (!%p985_p9) }
 0x1cd   : > { %v689_v10 = vadd.f32 %v683_v9, %v568_v5 }
 0x1ce   : > { %v777_v34 = vsub.f32 (!%p985_p9), %v769_v25, %v773_v28 }
 0x1cf   : > { %v733_v11 = vadd.f32 %v729_v8, %v689_v10  ;;  %756 = sbr.rel (%p985_p9) target bundleno = 685 (0x2ad), region = 139 }
 0x1d0   : > { %v687_v13 = vpop.xlane.xlu0 %686  ;;  %v781_v39 = vmax.f32 (!%p985_p9), %v777_v34, 0.0 }
 0x1d1   : > { %737 = vst.msk [vmem:[#allocation3 + $0x8] sm:$0xff] %vm723_vm5, %v733_v11  ;;  %v691_v14 = vadd.f32 %v687_v13, %v572_v57  ;;  %v803_v57 = vld [vmem:[%s1348_s5 + $0x10] sm:$0xff] (!%p985_p9)  ;;  %v857_v11 = vld [vmem:[%s1349_s6 + $0x18] sm:$0xff] (!%p985_p9) }
 0x1d2   : > { %v789_v43 = vadd.f32 (!%p985_p9), 1e-05, %v781_v39  ;;  %v814_v34 = vld [vmem:[#allocation4 + $0x8] sm:$0xff] (!%p985_p9) }
 0x1d3   : > { %v735_v15 = vadd.f32 %v731_v12, %v691_v14  ;;  %v767_v17 = vld [vmem:[#allocation3 + $0x10] sm:$0xff] (!%p985_p9)  ;;  %v855_v12 = vld [vmem:[%s1349_s6 + $0x8] sm:$0xff] (!%p985_p9) }
 0x1d4   : > { %v771_v20 = vmul.f32 (!%p985_p9), 0.001953125, %v767_v17 }
 0x1d5   : > { %739 = vst.msk [vmem:[#allocation3 + $0x18] sm:$0xff] %vm723_vm5, %v735_v15 }
 0x1d6   : > { %v779_v31 = vsub.f32 %v771_v20, %v775_v24 }
 0x1d8   : > { %v766_v33 = vld [vmem:[#allocation3 + $0x8] sm:$0xff]  ;;  %v783_v38 = vmax.f32 %v779_v31, 0.0  ;;  %v813_v31 = vld [vmem:[#allocation4] sm:$0xff] }
 0x1d9   : > { %v770_v37 = vmul.f32 0.001953125, %v766_v33  ;;  %v815_v33 = vld [vmem:[#allocation4 + $0x10] sm:$0xff] }
 0x1da   : > { %v791_v42 = vadd.f32 1e-05, %v783_v38 }
 0x1db   : > { %v778_v45 = vsub.f32 %v770_v37, %v774_v41 }
 0x1dc   : > { %v768_v27 = vld [vmem:[#allocation3 + $0x18] sm:$0xff]  ;;  %1052 = vrsqrt.f32 %v791_v42 }
 0x1dd   : > { %v772_v30 = vmul.f32 0.001953125, %v768_v27  ;;  %1054 = vrsqrt.f32 %v789_v43  ;;  %v782_v47 = vmax.f32 %v778_v45, 0.0 }
 0x1df   : > { %v780_v40 = vsub.f32 %v772_v30, %v776_v35  ;;  %v790_v48 = vadd.f32 1e-05, %v782_v47 }
 0x1e1   : > { %v784_v44 = vmax.f32 %v780_v40, 0.0 }
 0x1e3   : > { %v792_v46 = vadd.f32 1e-05, %v784_v44 }
 0x1e5   : > { %1056 = vrsqrt.f32 %v792_v46 }
 0x1e6   : > { %1058 = vrsqrt.f32 %v790_v48  ;;  %v1053_v51 = vpop.eup %1052 }
 0x1e7   : > { %v1055_v52 = vpop.eup %1054  ;;  %v799_v53 = vmul.f32 %v1053_v51, %v787_v49 }
 0x1e8   : > { %v797_v55 = vmul.f32 %v1055_v52, %v785_v50 }
 0x1e9   : > { %829 = vperm.xlu1 %1051, %v799_v53   ;;  %v807_v58 = vmul.f32 %v799_v53, %v763_v19 }
 0x1ea   : > { %819 = vperm.xlu0 %1050, %v797_v55   ;;  %v805_v61 = vmul.f32 %v797_v55, %v761_v22  ;;  %v882_v55 = vstv %s881_s15 }
 0x1eb   : > { %v811_v2 = vsub.f32 %v803_v57, %v807_v58 }
 0x1ec   : > { %v809_v3 = vsub.f32 %v801_v59, %v805_v61 }
 0x1ed   : > { %v860_v13 = vmul.f32 %v856_v6, %v811_v2 }
 0x1ee   : > { %v858_v8 = vmul.f32 %v854_v0, %v809_v3 }
 0x1ef   : > { %v1057_v56 = vpop.eup %1056  ;;  %v865_v18 = vsel %vm723_vm5, %v860_v13, 0.0 }
 0x1f0   : > { %v800_v62 = vmul.f32 %v1057_v56, %v788_v54  ;;  %v1059_v63 = vpop.eup %1058  ;;  %v862_v15 = vsel %vm723_vm5, %v858_v8, 0.0 }
 0x1f1   : > { %v798_v5 = vmul.f32 %v1059_v63, %v786_v60 }
 0x1f2   : > { %v808_v4 = vmul.f32 %v800_v62, %v764_v29  ;;  %834 = vperm.xlu1 %1051, %v800_v62  }
 0x1f3   : > { %v806_v10 = vmul.f32 %v798_v5, %v762_v36  ;;  %824 = vperm.xlu0 %1050, %v798_v5   ;;  %v816_v36 = vld [vmem:[#allocation4 + $0x18] sm:$0xff] }
 0x1f4   : > { %v812_v9 = vsub.f32 %v804_v1, %v808_v4 }
 0x1f5   : > { %v810_v14 = vsub.f32 %v802_v7, %v806_v10 }
 0x1f6   : > { %v861_v16 = vmul.f32 %v857_v11, %v812_v9 }
 0x1f7   : > { %v859_v17 = vmul.f32 %v855_v12, %v810_v14 }
 0x1f8   : > { %v867_v21 = vsel %vm723_vm5, %v861_v16, 0.0 }
 0x1f9   : > { %v863_v19 = vsel %vm723_vm5, %v859_v17, 0.0 }
 0x1fa   : > { %v864_v20 = vadd.f32 %v863_v19, %v862_v15 }
 0x1fc   : > { %v866_v22 = vadd.f32 %v865_v18, %v864_v20 }
 0x1fe   : > { %v868_v23 = vadd.f32 %v867_v21, %v866_v22 }
 0x200   : > { %v869_v24 = vrot.slane %v868_v23, 4 }
 0x202   : > { %v870_v25 = vadd.f32 %v869_v24, %v868_v23 }
 0x204   : > { %v871_v26 = vrot.slane %v870_v25, 2 }
 0x206   : > { %v872_v27 = vadd.f32 %v871_v26, %v870_v25 }
 0x208   : > { %v873_v28 = vrot.slane %v872_v27, 1 }
 0x20a   : > { %v874_v29 = vadd.f32 %v873_v28, %v872_v27 }
 0x20c   : > { %877 = vperm.xlu0 %1050, %v874_v29  }
 0x268   : > { %v830_v30 = vpop.permute.xlu1 %829 }
 0x269   : > { %v820_v32 = vpop.permute.xlu0 %819  ;;  %v839_v39 = vmul.f32 %v830_v30, %v815_v33 }
 0x26a   : > { %v837_v35 = vmul.f32 %v820_v32, %v813_v31 }
 0x26b   : > { %v844_v45 = vsel %vm748_vm8, %v839_v39, 0.0 }
 0x26c   : > { %v841_v41 = vsel %vm748_vm8, %v837_v35, 0.0 }
 0x271   : > { %v835_v37 = vpop.permute.xlu1 %834 }
 0x272   : > { %v825_v38 = vpop.permute.xlu0 %824  ;;  %v840_v42 = vmul.f32 %v835_v37, %v816_v36 }
 0x273   : > { %v838_v40 = vmul.f32 %v825_v38, %v814_v34 }
 0x274   : > { %v846_v47 = vsel %vm748_vm8, %v840_v42, 0.0 }
 0x275   : > { %v842_v43 = vsel %vm748_vm8, %v838_v40, 0.0 }
 0x276   : > { %v843_v44 = vadd.f32 %v842_v43, %v841_v41 }
 0x278   : > { %v845_v46 = vadd.f32 %v844_v45, %v843_v44 }
 0x27a   : > { %v847_v48 = vadd.f32 %v846_v47, %v845_v46 }
 0x27c   : > { %v848_v49 = vrot.slane %v847_v48, 4 }
 0x27e   : > { %v849_v50 = vadd.f32 %v848_v49, %v847_v48 }
 0x280   : > { %v850_v51 = vrot.slane %v849_v50, 2 }
 0x282   : > { %v851_v52 = vadd.f32 %v850_v51, %v849_v50 }
 0x284   : > { %v852_v53 = vrot.slane %v851_v52, 1 }
 0x286   : > { %v853_v54 = vadd.f32 %v852_v53, %v851_v52 }
 0x28b   : > { %v878_v56 = vpop.permute.xlu0 %877 }
 0x28c   : > { %v880_v57 = vadd.f32 %v878_v56, %v853_v54 }
 0x28e   : > { %v883_v58 = vadd.f32 %v882_v55, %v880_v57 }
 0x290   : > { %v884_v59 = vsub.f32 0.0, %v883_v58 }
 0x292   : > { %v885_v60 = vmul.f32 1.442695, %v884_v59 }
 0x294   : > { %1060 = vpow2.f32 %v885_v60 }
 0x29e   : > { %v1061_v61 = vpop.eup %1060 }
 0x29f   : > { %v887_v62 = vadd.f32 1.0, %v1061_v61 }
 0x2a1   : > { %1062 = vrcp.f32 %v887_v62 }
 0x2ab   : > { %v1063_v63 = vpop.eup %1062 }
 0x2ac   : > { %891 = vst.msk [vmem:[#allocation8] sm:$0x1] %vm890_vm9, %v1063_v63 }
 0x2ad PF: > { %p1012_p10 = scmp.eq.s32.totalorder %s1188_s7, 1  ;;  %s1123_s16 = smov [#allocation8]  }
 0x2ae   : > { %s899_s29 = sshll.u32 %s1123_s16, 4  ;;  %s900_s29 = int_to_ptr.vmem [resolvable:$true] %s899_s29 }
 0x2af   : > { %s1064_s9 = scalar_lea.vmem %s900_s29, 16  ;;  %s1070_s17 = scalar_lea.vmem %s900_s29, 32 }
 0x2b0   : > { %p1065_p11 = scmp.ne.s32.totalorder %s900_s29, %s1064_s9  ;;  %p1071_p0 = scmp.lt.s32.totalorder %s900_s29, %s900_s29 }
 0x2b1   : > { %p1072_p1 = scmp.lt.s32.totalorder %s1070_s17, %s1064_s9 }
 0x2b2   : > { %p1066_p12 = pnand %p1065_p11, %p1012_p10 }
 0x2b3   : > { %p1073_p2 = por %p1072_p1, %p1071_p0 }
 0x2b4   : > { %p1067_p13 = pneg %p1066_p12 }
 0x2b6   : > { %p1074_p3 = pnand %p1073_p2, %p1067_p13 }
 0x2b8   : > { %1077 = shalt.err (!%p1074_p3)
}
 0x2b9   : > { %s1078_s20 = scalar_lea.hbm %s1351_s8, 16 }
 0x2ba   : > { %p1079_p4 = scmp.ne.s32.totalorder %s1351_s8, %s1078_s20  ;;  %p1084_p7 = scmp.lt.u32.totalorder %s1078_s20, %s1351_s8 }
 0x2bc   : > { %p1080_p5 = pnand %p1079_p4, %p1012_p10 }
 0x2be   : > { %p1081_p6 = pneg %p1080_p5 }
 0x2c0   : > { %p1086_p8 = pnand %p1084_p7, %p1081_p6 }
 0x2c2   : > { %1089 = shalt.err (!%p1086_p8)
}
 0x2c3   : > { %1009 = dma.vmem_to_hbm [thread:$0]  (%p1012_p10), %s900_s29, 16, %s1351_s8, [#allocation9]  }
 0x2c4   : > { %1103 = dma.done.wait (%p1012_p10), [#allocation9], 16  }
 0x2c5   : > { %1105 = vsyncadd (%p1012_p10), [#allocation9], 4294967280 }
 0x2c6 PF: > { %p17_p9 = scmp.ge.s32.totalorder %s1191_s10, 4   ;;  %s1353_s29 = smov %s1112_s30 }
 0x2c7   : > { %s1354_s30 = smov %s1200_s13  ;;  %s1355_s9 = smov %s1191_s10 }
 0x2c8   :  { %19 = sbr.rel (!%p17_p9) target bundleno = 4 (0x4), region = 180 }
 0x2cf   :  { %912 = vsyncpa [#allocation9], 1 }
 0x2d0   :  { %914 = vsyncpa [#allocation9 + $0x1], 1 }

</bundles_post_ra>
